<compile_context>
chip_gen: v7x
topology: tpu7x:2x2x1
jax: 0.10.0
libtpu: 0.0.40
codegen_flags: <defaults>
</compile_context>

<pallas_src>
import functools

import jax
import jax.numpy as jnp
from jax.experimental import pallas as pl
from jax.experimental.pallas import tpu as pltpu

LANES = 128


# ----------------------------------------------------------------------------
# Pallas kernel: whole forward hot path for one grid step (Bt graphs, flat)
# ----------------------------------------------------------------------------
def gnn_kernel(a_ref, x_ref, w1_ref, w2_ref, p_ref, o_ref, *, inv_n, mxu_dtype):
    m, cin = x_ref.shape               # m = Bt * N (batch flattened into M)
    hid = w1_ref.shape[1]
    cout = w2_ref.shape[1]
    bt = o_ref.shape[0]
    n = m // bt

    a = a_ref[0]                       # [m, m] block-diagonal A_hat (this step)
    x = x_ref[...]                     # [m, cin]
    w1 = w1_ref[...]                   # [cin, hid]
    w2 = w2_ref[...]                   # [hid, cout]

    p = p_ref[...]                     # [8, 128] packed f32 params (one vreg)
    b1 = p[0:1, :hid]                  # [1, hid]
    b2 = p[1:2, :cout]                 # [1, cout]
    fcw = p[2:3, :cout]                # [1, cout]
    fcb = p[3:4, 0:1]                  # [1, 1]

    # ---- conv1: relu(A_hat @ (X W1) + b1) ----------------------------------
    xw = jnp.dot(x, w1, preferred_element_type=jnp.float32)            # [m, hid]
    h = jnp.dot(a, xw.astype(mxu_dtype), preferred_element_type=jnp.float32)
    h = jnp.maximum(h + b1, 0.0)                                        # f32

    # ---- conv2: relu(A_hat @ (H W2) + b2) ----------------------------------
    hw = jnp.dot(h.astype(mxu_dtype), w2, preferred_element_type=jnp.float32)
    h2 = jnp.dot(a, hw.astype(mxu_dtype), preferred_element_type=jnp.float32)
    h2 = jnp.maximum(h2 + b2, 0.0)                                       # [m, cout]

    # ---- fused mean-pool + fc head (VPU multiply-reduce) --------------------
    pooled = jnp.sum(h2.reshape(bt, n, cout), axis=1) * inv_n            # [bt, cout]
    score = jnp.sum(pooled * fcw, axis=1, keepdims=True) + fcb           # [bt, 1]

    # lane-dense write (unmasked vst); wrapper reads lane 0 of each row.
    # TODO(synk): for large B pack 128 scores per row instead of broadcasting.
    o_ref[...] = jnp.broadcast_to(score, o_ref.shape).astype(o_ref.dtype)


# ----------------------------------------------------------------------------
# Wrapper
# ----------------------------------------------------------------------------
def _default_graphs_per_step(batch):
    kind = jax.devices()[0].device_kind.lower()
    steps = 2 if "v7" in kind else 1   # v7x: 2 TCs -> even parallel grid; else 1 step
    if batch % steps != 0:
        steps = 1
    return batch // steps


def _block_diag_a(a_hat, bt):
    """[B, N, N] per-graph A_hat -> [B//bt, bt*N, bt*N] block-diagonal per step."""
    b, n, _ = a_hat.shape
    steps = b // bt
    a = a_hat.reshape(steps, bt, n, n)
    eye = jnp.eye(bt, dtype=a_hat.dtype)
    blk = jnp.einsum('sgij,gh->sgihj', a, eye)           # zero off-diagonal blocks
    return blk.reshape(steps, bt * n, bt * n)


def gnn_forward(a_hat, x, w1, b1, w2, b2, fc_w, fc_b, *,
                graphs_per_step=None, mxu_dtype=jnp.float32):
    b, n, cin = x.shape
    hid = w1.shape[1]
    cout = w2.shape[1]
    bt = graphs_per_step if graphs_per_step is not None else _default_graphs_per_step(b)
    assert b % bt == 0, "batch must be a multiple of graphs_per_step"
    steps = b // bt
    m = bt * n
    assert hid <= LANES and cout <= LANES, "param slab assumes hid/cout <= 128"

    a_blk = _block_diag_a(a_hat.astype(mxu_dtype), bt)    # [steps, m, m]
    x_flat = x.reshape(b * n, cin).astype(mxu_dtype)      # [B*N, cin]
    w1_c = w1.astype(mxu_dtype)
    w2_c = w2.astype(mxu_dtype)

    # pack biases + fc head into one (8,128) f32 slab (single tiny input)
    slab = jnp.zeros((8, LANES), jnp.float32)
    slab = slab.at[0, :hid].set(b1.astype(jnp.float32))
    slab = slab.at[1, :cout].set(b2.astype(jnp.float32))
    slab = slab.at[2, :cout].set(fc_w.reshape(-1).astype(jnp.float32))
    slab = slab.at[3, 0].set(fc_b.reshape(-1)[0].astype(jnp.float32))

    elt = jnp.dtype(mxu_dtype).itemsize
    flops = 2 * (b * n * cin * hid + steps * m * m * hid
                 + b * n * hid * cout + steps * m * m * cout)
    bytes_accessed = ((a_blk.size + x_flat.size + w1_c.size + w2_c.size) * elt
                      + 4 * (slab.size + b * LANES))

    kernel = functools.partial(gnn_kernel, inv_n=1.0 / n, mxu_dtype=mxu_dtype)

    out_padded = pl.pallas_call(
        kernel,
        out_shape=jax.ShapeDtypeStruct((b, LANES), jnp.float32),
        grid=(steps,),
        in_specs=[
            pl.BlockSpec((1, m, m), lambda i: (i, 0, 0)),   # block-diag A_hat
            pl.BlockSpec((m, cin), lambda i: (i, 0)),       # X (batch flat into M)
            pl.BlockSpec((cin, hid), lambda i: (0, 0)),     # W1
            pl.BlockSpec((hid, cout), lambda i: (0, 0)),    # W2
            pl.BlockSpec((8, LANES), lambda i: (0, 0)),     # packed param slab
        ],
        out_specs=pl.BlockSpec((bt, LANES), lambda i: (i, 0)),
        compiler_params=pltpu.CompilerParams(
            dimension_semantics=("parallel",)),
        cost_estimate=pl.CostEstimate(
            flops=flops, transcendentals=0, bytes_accessed=bytes_accessed),
    )(a_blk, x_flat, w1_c, w2_c, slab)

    # lane 0 of each row holds the per-graph scalar (torch returns shape-[1])
    return out_padded[:, 0]


# ----------------------------------------------------------------------------
# Glue: dense symmetric-normalized adjacency (PyG GCNConv gcn_norm semantics)
# NOTE: .at[dst, src].add assumes edge_index is duplicate-free (as in PyG).
# ----------------------------------------------------------------------------
def build_a_hat(edge_index, num_nodes):
    src, dst = edge_index[0], edge_index[1]
    loop = jnp.arange(num_nodes, dtype=edge_index.dtype)
    src = jnp.concatenate([src, loop])            # add self loops
    dst = jnp.concatenate([dst, loop])
    ew = jnp.ones(src.shape[0], dtype=jnp.float32)
    deg = jnp.zeros((num_nodes,), jnp.float32).at[dst].add(ew)
    dis = jnp.where(deg > 0, 1.0 / jnp.sqrt(deg), 0.0)
    norm = dis[src] * ew * dis[dst]
    a_hat = jnp.zeros((num_nodes, num_nodes), jnp.float32).at[dst, src].add(norm)
    return a_hat


def xavier_uniform(key, fan_in, fan_out):
    bound = jnp.sqrt(6.0 / (fan_in + fan_out))
    return jax.random.uniform(key, (fan_in, fan_out), jnp.float32, -bound, bound)


def ref_forward(a_hat, x, w1, b1, w2, b2, fc_w, fc_b):
    """Pure-JAX f32 reference (matches the torch forward), vmapped over graphs."""
    def one(a, xi):
        h = jnp.maximum(a @ (xi @ w1) + b1, 0.0)
        h = jnp.maximum(a @ (h @ w2) + b2, 0.0)
        m = jnp.mean(h, axis=0)
        return m @ fc_w.reshape(-1) + fc_b[0]
    return jax.vmap(one)(a_hat, x)


if __name__ == "__main__":
    # small shapes: B=16 graphs, N=8 nodes, in=4, hidden=32, out=16
    B, N, C_IN, C_HID, C_OUT = 16, 8, 4, 32, 16
    key = jax.random.PRNGKey(0)
    k_x, k_w1, k_w2, k_fc = jax.random.split(key, 4)

    # batched node features; deterministic bidirectional ring graph
    x = jax.random.normal(k_x, (B, N, C_IN), jnp.float32)
    fwd = jnp.stack([jnp.arange(N), (jnp.arange(N) + 1) % N])      # i -> i+1
    bwd = jnp.stack([(jnp.arange(N) + 1) % N, jnp.arange(N)])      # i+1 -> i
    edge_index = jnp.concatenate([fwd, bwd], axis=1).astype(jnp.int32)  # [2, 16]
    # edge_attr exists in the torch data object but is unused by forward.

    a_single = build_a_hat(edge_index, N)                 # [N, N]
    a_hat = jnp.tile(a_single[None], (B, 1, 1))           # [B, N, N]

    # parameters (deterministic, mirror the torch __init__ shapes)
    w1 = xavier_uniform(k_w1, C_IN, C_HID)                # GCNConv1 weight (glorot)
    b1 = jnp.zeros((C_HID,), jnp.float32)                 # GCNConv bias init = zeros
    w2 = xavier_uniform(k_w2, C_HID, C_OUT)               # GCNConv2 weight
    b2 = jnp.zeros((C_OUT,), jnp.float32)
    fc_w = xavier_uniform(k_fc, C_OUT, 1)                 # Linear(out_channels, 1)
    fc_b = jnp.full((1,), 0.01, jnp.float32)              # fc.bias.data.fill_(0.01)

    out = gnn_forward(a_hat, x, w1, b1, w2, b2, fc_w, fc_b)
    jax.block_until_ready(out)
    assert out.shape == (B,)

    # validate against f32 reference (f32 MXU path -> tight agreement)
    ref = ref_forward(a_hat, x, w1, b1, w2, b2, fc_w, fc_b)
    assert jnp.allclose(out, ref, atol=2e-2, rtol=2e-2), (out, ref)

    print("KERNEL_OK")
</pallas_src>

<mosaic_0001>
module attributes {stable_mosaic.version = 11 : i64} {
  func.func @gnn_kernel(%arg0: i32, %arg1: memref<1x128x128xf32, #tpu.memory_space<vmem>>, %arg2: memref<128x4xf32, #tpu.memory_space<vmem>>, %arg3: memref<4x32xf32, #tpu.memory_space<vmem>>, %arg4: memref<32x16xf32, #tpu.memory_space<vmem>>, %arg5: memref<8x128xf32, #tpu.memory_space<vmem>>, %arg6: memref<16x128xf32, #tpu.memory_space<vmem>>) attributes {dimension_semantics = [#tpu.dimension_semantics<parallel>], iteration_bounds = array<i64: 1>, scalar_prefetch = 0 : i64, scratch_operands = 0 : i64, tpu.core_type = #tpu.core_type<tc>, window_params = [{transform_indices = @transform_0, window_bounds = array<i64: 1, 128, 128>}, {transform_indices = @transform_1, window_bounds = array<i64: 128, 4>}, {pipeline_mode = #tpu.pipeline_mode<synchronous>, transform_indices = @transform_2, window_bounds = array<i64: 4, 32>}, {pipeline_mode = #tpu.pipeline_mode<synchronous>, transform_indices = @transform_3, window_bounds = array<i64: 32, 16>}, {pipeline_mode = #tpu.pipeline_mode<synchronous>, transform_indices = @transform_4, window_bounds = array<i64: 8, 128>}, {transform_indices = @transform_5, window_bounds = array<i64: 16, 128>}]} {
    %c0 = arith.constant 0 : index
    %c0_0 = arith.constant 0 : index
    %c0_1 = arith.constant 0 : index
    %0 = vector.load %arg1[%c0, %c0_0, %c0_1] : memref<1x128x128xf32, #tpu.memory_space<vmem>>, vector<1x128x128xf32>
    %1 = vector.shape_cast %0 : vector<1x128x128xf32> to vector<128x128xf32>
    %c0_2 = arith.constant 0 : index
    %c0_3 = arith.constant 0 : index
    %2 = vector.load %arg2[%c0_2, %c0_3] : memref<128x4xf32, #tpu.memory_space<vmem>>, vector<128x4xf32>
    %c0_4 = arith.constant 0 : index
    %c0_5 = arith.constant 0 : index
    %3 = vector.load %arg3[%c0_4, %c0_5] : memref<4x32xf32, #tpu.memory_space<vmem>>, vector<4x32xf32>
    %c0_6 = arith.constant 0 : index
    %c0_7 = arith.constant 0 : index
    %4 = vector.load %arg4[%c0_6, %c0_7] : memref<32x16xf32, #tpu.memory_space<vmem>>, vector<32x16xf32>
    %c0_8 = arith.constant 0 : index
    %c0_9 = arith.constant 0 : index
    %5 = vector.load %arg5[%c0_8, %c0_9] : memref<8x128xf32, #tpu.memory_space<vmem>>, vector<8x128xf32>
    %6 = vector.extract_strided_slice %5 {offsets = [0, 0], sizes = [1, 32], strides = [1, 1]} : vector<8x128xf32> to vector<1x32xf32>
    %7 = vector.extract_strided_slice %5 {offsets = [1, 0], sizes = [1, 16], strides = [1, 1]} : vector<8x128xf32> to vector<1x16xf32>
    %8 = vector.extract_strided_slice %5 {offsets = [2, 0], sizes = [1, 16], strides = [1, 1]} : vector<8x128xf32> to vector<1x16xf32>
    %9 = vector.extract_strided_slice %5 {offsets = [3, 0], sizes = [1, 1], strides = [1, 1]} : vector<8x128xf32> to vector<1x1xf32>
    %cst = arith.constant dense<0.000000e+00> : vector<128x32xf32>
    %10 = tpu.matmul %2, %3, %cst {dimension_numbers = #tpu.dot_dimension_numbers<[1], [0], [0], [1], [0, 0, 1, 1], [], []>} : vector<128x4xf32>, vector<4x32xf32>, vector<128x32xf32> -> vector<128x32xf32>
    %cst_10 = arith.constant dense<0.000000e+00> : vector<128x32xf32>
    %11 = tpu.matmul %1, %10, %cst_10 {dimension_numbers = #tpu.dot_dimension_numbers<[1], [0], [0], [1], [0, 0, 1, 1], [], []>} : vector<128x128xf32>, vector<128x32xf32>, vector<128x32xf32> -> vector<128x32xf32>
    %12 = vector.broadcast %6 : vector<1x32xf32> to vector<128x32xf32>
    %13 = arith.addf %11, %12 : vector<128x32xf32>
    %cst_11 = arith.constant 0.000000e+00 : f32
    %14 = vector.broadcast %cst_11 : f32 to vector<128x32xf32>
    %15 = arith.maximumf %13, %14 : vector<128x32xf32>
    %cst_12 = arith.constant dense<0.000000e+00> : vector<128x16xf32>
    %16 = tpu.matmul %15, %4, %cst_12 {dimension_numbers = #tpu.dot_dimension_numbers<[1], [0], [0], [1], [0, 0, 1, 1], [], []>} : vector<128x32xf32>, vector<32x16xf32>, vector<128x16xf32> -> vector<128x16xf32>
    %cst_13 = arith.constant dense<0.000000e+00> : vector<128x16xf32>
    %17 = tpu.matmul %1, %16, %cst_13 {dimension_numbers = #tpu.dot_dimension_numbers<[1], [0], [0], [1], [0, 0, 1, 1], [], []>} : vector<128x128xf32>, vector<128x16xf32>, vector<128x16xf32> -> vector<128x16xf32>
    %18 = vector.broadcast %7 : vector<1x16xf32> to vector<128x16xf32>
    %19 = arith.addf %17, %18 : vector<128x16xf32>
    %cst_14 = arith.constant 0.000000e+00 : f32
    %20 = vector.broadcast %cst_14 : f32 to vector<128x16xf32>
    %21 = arith.maximumf %19, %20 : vector<128x16xf32>
    %22 = vector.shape_cast %21 : vector<128x16xf32> to vector<16x8x16xf32>
    %cst_15 = arith.constant dense<0.000000e+00> : vector<16x16xf32>
    %23 = vector.multi_reduction <add>, %22, %cst_15 [1] : vector<16x8x16xf32> to vector<16x16xf32>
    %cst_16 = arith.constant 1.250000e-01 : f32
    %24 = vector.broadcast %cst_16 : f32 to vector<16x16xf32>
    %25 = arith.mulf %23, %24 : vector<16x16xf32>
    %26 = vector.broadcast %8 : vector<1x16xf32> to vector<16x16xf32>
    %27 = arith.mulf %25, %26 : vector<16x16xf32>
    %cst_17 = arith.constant dense<0.000000e+00> : vector<16xf32>
    %28 = vector.multi_reduction <add>, %27, %cst_17 [1] : vector<16x16xf32> to vector<16xf32>
    %29 = vector.shape_cast %28 : vector<16xf32> to vector<16x1xf32>
    %30 = vector.broadcast %9 : vector<1x1xf32> to vector<16x1xf32>
    %31 = arith.addf %29, %30 : vector<16x1xf32>
    %32 = vector.shape_cast %31 : vector<16x1xf32> to vector<16x1xf32>
    %33 = vector.broadcast %32 : vector<16x1xf32> to vector<16x128xf32>
    %c0_18 = arith.constant 0 : index
    %c0_19 = arith.constant 0 : index
    %34 = vector.load %arg6[%c0_18, %c0_19] : memref<16x128xf32, #tpu.memory_space<vmem>>, vector<16x128xf32>
    tpu.vector_store %arg6[%c0_18, %c0_19], %33 {strides = array<i32>} : memref<16x128xf32, #tpu.memory_space<vmem>>, vector<16x128xf32>,
    return
  }
  func.func @transform_0(%arg0: i32) -> (i32, i32, i32) {
    %c0_i32 = arith.constant 0 : i32
    %c0_i32_0 = arith.constant 0 : i32
    %c0_i32_1 = arith.constant 0 : i32
    return %arg0, %c0_i32, %c0_i32_0 : i32, i32, i32
  }
  func.func @transform_1(%arg0: i32) -> (i32, i32) {
    %c0_i32 = arith.constant 0 : i32
    %c0_i32_0 = arith.constant 0 : i32
    return %arg0, %c0_i32 : i32, i32
  }
  func.func @transform_2(%arg0: i32) -> (i32, i32) {
    %c0_i32 = arith.constant 0 : i32
    %c0_i32_0 = arith.constant 0 : i32
    %c0_i32_1 = arith.constant 0 : i32
    return %c0_i32, %c0_i32_0 : i32, i32
  }
  func.func @transform_3(%arg0: i32) -> (i32, i32) {
    %c0_i32 = arith.constant 0 : i32
    %c0_i32_0 = arith.constant 0 : i32
    %c0_i32_1 = arith.constant 0 : i32
    return %c0_i32, %c0_i32_0 : i32, i32
  }
  func.func @transform_4(%arg0: i32) -> (i32, i32) {
    %c0_i32 = arith.constant 0 : i32
    %c0_i32_0 = arith.constant 0 : i32
    %c0_i32_1 = arith.constant 0 : i32
    return %c0_i32, %c0_i32_0 : i32, i32
  }
  func.func @transform_5(%arg0: i32) -> (i32, i32) {
    %c0_i32 = arith.constant 0 : i32
    %c0_i32_0 = arith.constant 0 : i32
    return %arg0, %c0_i32 : i32, i32
  }
}

</mosaic_0001>

<bundles_post_ra>
// kernel: tpu_custom_call.1
= control target key start
LH: loop header
LB: loop body
LE: loop exit
PB: predicated region body
PF: predicated region fallthrough
CT: control target
= control target key end

     0   :  { %vm108_vm0 = vcmask 1043456   ;;  %vm59_vm1 = vcmask 31744   ;;  %s1824_s0 = inlined_call_operand.vmem [shape: f32[1,128,128], index: 0, kind: input, shape index: {}]   ;;  %s1825_s1 = inlined_call_operand.vmem [shape: f32[128,4], index: 1, kind: input, shape index: {}]   ;;  %s1826_s2 = inlined_call_operand.vmem [shape: f32[4,32], index: 2, kind: input, shape index: {}]   ;;  %s1827_s3 = inlined_call_operand.vmem [shape: f32[32,16], index: 3, kind: input, shape index: {}]   ;;  %s1828_s4 = inlined_call_operand.vmem [shape: f32[8,128], index: 4, kind: input, shape index: {}]   ;;  %s1829_s5 = inlined_call_operand.hbm [shape: f32[16,128], index: 5, kind: output, shape index: {}]  }
   0x1   :  { %v53_v0 = vld [vmem:[%s1826_s2] sm:$0xf]  ;;  %v38_v2 = vld [vmem:[%s1825_s1 + $0x8] sm:$0xff]  ;;  %v39_v3 = vld [vmem:[%s1825_s1 + $0x10] sm:$0xff] }
   0x2   :  { %v37_v1 = vld [vmem:[%s1825_s1] sm:$0xff]  ;;  %1157 = vmatprep.subr.msk.mxu0 %vm108_vm0, %v53_v0  ;;  %v40_v4 = vld [vmem:[%s1825_s1 + $0x18] sm:$0xff] }
   0x3   :  { %1159 = vmatprep.mubr.msk.f32.mxu0 %vm59_vm1, %v37_v1  ;;  %1158 = vmatpush3.msk.msra.mxu0 %vm108_vm0, %v53_v0  ;;  %v41_v5 = vld [vmem:[%s1825_s1 + $0x20] sm:$0xff] }
   0x4   :  { %1160 = vmatmul.mubr.msk.f32.vlgmr.msra.gmra.mrb[0].mxu0 %vm59_vm1, %v38_v2 }
   0x5   :  { %1162 = vmatprep.mubr.msk.f32.mxu0 %vm59_vm1, %v39_v3 }
   0x6   :  { %10 = vsyncpa [#allocation3], 0  ;;  %v42_v6 = vld [vmem:[%s1825_s1 + $0x28] sm:$0xff]  ;;  %v43_v7 = vld [vmem:[%s1825_s1 + $0x30] sm:$0xff]  ;;  %v257_v63 = vlaneseq  ;;  %vm422_vm2 = vcmask 261120   ;;  %vm781_vm3 = vcmask 130048  }
   0x7   :  { %v44_v8 = vld [vmem:[%s1825_s1 + $0x38] sm:$0xff]  ;;  %v45_v9 = vld [vmem:[%s1825_s1 + $0x40] sm:$0xff]  ;;  %v46_v10 = vld [vmem:[%s1825_s1 + $0x48] sm:$0xff]  ;;  %vm947_vm4 = vcmask 1041409   ;;  %vm950_vm5 = vcmask 1042434   ;;  %vm953_vm6 = vcmask 1043459  }
   0x8   :  { %1163 = vmatmul.mubr.msk.f32.gmra.mrb[2].mxu0 %vm59_vm1, %v40_v4  ;;  %v47_v11 = vld [vmem:[%s1825_s1 + $0x50] sm:$0xff]  ;;  %v48_v12 = vld [vmem:[%s1825_s1 + $0x58] sm:$0xff]  ;;  %v49_v13 = vld [vmem:[%s1825_s1 + $0x60] sm:$0xff]  ;;  %v1651_v0 = vshrl.u32 %v257_v63, 7  ;;  %vm956_vm7 = vcmask 1044484   ;;  %vm959_vm8 = vcmask 1045509  }
   0x9   :  { %1165 = vmatprep.mubr.msk.f32.mxu0 %vm59_vm1, %v41_v5  ;;  %v50_v14 = vld [vmem:[%s1825_s1 + $0x68] sm:$0xff]  ;;  %v51_v15 = vld [vmem:[%s1825_s1 + $0x70] sm:$0xff]  ;;  %v52_v16 = vld [vmem:[%s1825_s1 + $0x78] sm:$0xff]  ;;  %vm962_vm9 = vcmask 1046534   ;;  %vm965_vm10 = vcmask 1047559  }
   0xa   :  { %v1549_v17 = vld [vmem:[%s1824_s0] sm:$0xff]  ;;  %v55_v19 = vld [vmem:[%s1827_s3 + $0x8] sm:$0xff]  ;;  %v56_v20 = vld [vmem:[%s1827_s3 + $0x10] sm:$0xff]  ;;  %v259_v1 = vsub.s32 0, %v1651_v0 }
   0xb   :  { %1215 = vmatprep.mubr.f32.mxu1 %v1549_v17  ;;  %v54_v18 = vld [vmem:[%s1827_s3] sm:$0xff]  ;;  %v57_v22 = vld [vmem:[%s1827_s3 + $0x18] sm:$0xff]  ;;  %v1567_v48 = vld [vmem:[%s1824_s0 + $0x8] sm:$0xff] }
   0xc   :  { %1166 = vmatmul.mubr.msk.f32.gmra.mrb[4].mxu0 %vm59_vm1, %v42_v6  ;;  %v1359_v21 = vpack.c.bf16 %v55_v19, %v54_v18  ;;  %v1363_v23 = vpack.c.bf16 %v57_v22, %v56_v20  ;;  %v1572_v49 = vld [vmem:[%s1824_s0 + $0x10] sm:$0xff]  ;;  %v1579_v50 = vld [vmem:[%s1824_s0 + $0x18] sm:$0xff]  ;;  %v1584_v51 = vld [vmem:[%s1824_s0 + $0x20] sm:$0xff] }
   0xd   :  { %1168 = vmatprep.mubr.msk.f32.mxu0 %vm59_vm1, %v43_v7  ;;  %v1591_v52 = vld [vmem:[%s1824_s0 + $0x28] sm:$0xff]  ;;  %v27_v53 = vld [vmem:[%s1824_s0 + $0x30] sm:$0xff]  ;;  %v1600_v54 = vld [vmem:[%s1824_s0 + $0x38] sm:$0xff] }
   0xe   :  { %1360 = vmatprep.subr.bf16.mxu0 %v1359_v21  ;;  %v1605_v55 = vld [vmem:[%s1824_s0 + $0x40] sm:$0xff]  ;;  %v1612_v56 = vld [vmem:[%s1824_s0 + $0x48] sm:$0xff]  ;;  %v1617_v57 = vld [vmem:[%s1824_s0 + $0x50] sm:$0xff] }
   0xf   :  { %1362 = vmatpush3.bf16.msra.mxu0 %v1359_v21  ;;  %v1624_v58 = vld [vmem:[%s1824_s0 + $0x58] sm:$0xff]  ;;  %v1629_v59 = vld [vmem:[%s1824_s0 + $0x60] sm:$0xff]  ;;  %v1636_v60 = vld [vmem:[%s1824_s0 + $0x68] sm:$0xff] }
  0x10   :  { %1169 = vmatmul.mubr.msk.f32.gmra.mrb[6].mxu0 %vm59_vm1, %v44_v8  ;;  %1364 = vmatprep.subr.bf16.mxu0 %v1363_v23  ;;  %v1641_v61 = vld [vmem:[%s1824_s0 + $0x70] sm:$0xff]  ;;  %v1648_v62 = vld [vmem:[%s1824_s0 + $0x78] sm:$0xff]  ;;  %v1657_v2 = vld [vmem:[%s1828_s4] sm:$0xff]  ;;  %s1446_s0 = smov [#allocation2]  }
  0x11   :  { %1171 = vmatprep.mubr.msk.f32.mxu0 %vm59_vm1, %v45_v9  ;;  %v260_v3 = vrot.slane %v1657_v2, %v259_v1  ;;  %s1012_s4 = sshll.u32 %s1446_s0, 4  ;;  %s1013_s4 = int_to_ptr.vmem [resolvable:$true] %s1012_s4 }
  0x12   :  { %s1421_s12 = scalar_lea.vmem %s1013_s4, 256  ;;  %p1426_p1 = scmp.lt.s32.totalorder %s1013_s4, %s1013_s4 }
  0x13   :  { %1366 = vmatpush3.bf16.msra.mxu0 %v1363_v23  ;;  %p1422_p0 = scmp.ne.s32.totalorder %s1013_s4, %s1421_s12  ;;  %p1427_p2 = scmp.lt.s32.totalorder %s1421_s12, %s1421_s12 }
  0x14   :  { %1172 = vmatmul.mubr.msk.f32.gmra.mrb[8].mxu0 %vm59_vm1, %v46_v10 }
  0x15   :  { %1174 = vmatprep.mubr.msk.f32.mxu0 %vm59_vm1, %v47_v11  ;;  %p1428_p3 = por %p1427_p2, %p1426_p1 }
  0x17   :  { %p1429_p4 = pnand %p1428_p3, %p1422_p0 }
  0x18   :  { %1175 = vmatmul.mubr.msk.f32.gmra.mrb[10].mxu0 %vm59_vm1, %v48_v12 }
  0x19   :  { %1177 = vmatprep.mubr.msk.f32.mxu0 %vm59_vm1, %v49_v13 }
  0x1c   :  { %1178 = vmatmul.mubr.msk.f32.gmra.mrb[12].mxu0 %vm59_vm1, %v50_v14 }
  0x1d   :  { %1180 = vmatprep.mubr.msk.f32.mxu0 %vm59_vm1, %v51_v15 }
  0x20   :  { %1181 = vmatmul.mubr.msk.f32.gmra.mrb[14].mxu0 %vm59_vm1, %v52_v16 }
  0xd7   :  { %v1161_v24 = vpop.f32.mrb[0].mxu0 }
  0xd8   :  { %v178_v25 = vpop.f32.mrb[1].mxu0 }
  0xd9   :  { %v1327_v26 = vpack.c.bf16 %v1161_v24, %v178_v25 }
  0xdb   :  { %v1164_v27 = vpop.f32.mrb[2].mxu0  ;;  %1328 = vmatprep.subr.bf16.mxu1 %v1327_v26 }
  0xdc   :  { %v188_v28 = vpop.f32.mrb[3].mxu0  ;;  %1330 = vmatpush3.bf16.msra.mxu1 %v1327_v26 }
  0xdd   :  { %v1331_v29 = vpack.c.bf16 %v1164_v27, %v188_v28 }
  0xdf   :  { %v1167_v30 = vpop.f32.mrb[4].mxu0  ;;  %1332 = vmatprep.subr.bf16.mxu1 %v1331_v29 }
  0xe0   :  { %v198_v31 = vpop.f32.mrb[5].mxu0  ;;  %1334 = vmatpush3.bf16.msra.mxu1 %v1331_v29 }
  0xe1   :  { %v1335_v32 = vpack.c.bf16 %v1167_v30, %v198_v31 }
  0xe3   :  { %v1170_v33 = vpop.f32.mrb[6].mxu0  ;;  %1336 = vmatprep.subr.bf16.mxu1 %v1335_v32 }
  0xe4   :  { %v208_v34 = vpop.f32.mrb[7].mxu0  ;;  %1338 = vmatpush3.bf16.msra.mxu1 %v1335_v32 }
  0xe5   :  { %v1339_v35 = vpack.c.bf16 %v1170_v33, %v208_v34 }
  0xe7   :  { %v1173_v36 = vpop.f32.mrb[8].mxu0  ;;  %1340 = vmatprep.subr.bf16.mxu1 %v1339_v35 }
  0xe8   :  { %v218_v37 = vpop.f32.mrb[9].mxu0  ;;  %1342 = vmatpush3.bf16.msra.mxu1 %v1339_v35 }
  0xe9   :  { %v1343_v38 = vpack.c.bf16 %v1173_v36, %v218_v37 }
  0xeb   :  { %v1176_v39 = vpop.f32.mrb[10].mxu0  ;;  %1344 = vmatprep.subr.bf16.mxu1 %v1343_v38 }
  0xec   :  { %v228_v40 = vpop.f32.mrb[11].mxu0  ;;  %1346 = vmatpush3.bf16.msra.mxu1 %v1343_v38 }
  0xed   :  { %v1347_v41 = vpack.c.bf16 %v1176_v39, %v228_v40 }
  0xef   :  { %v1179_v42 = vpop.f32.mrb[12].mxu0  ;;  %1348 = vmatprep.subr.bf16.mxu1 %v1347_v41 }
  0xf0   :  { %v238_v43 = vpop.f32.mrb[13].mxu0  ;;  %1350 = vmatpush3.bf16.msra.mxu1 %v1347_v41 }
  0xf1   :  { %v1351_v44 = vpack.c.bf16 %v1179_v42, %v238_v43 }
  0xf3   :  { %v1182_v45 = vpop.f32.mrb[14].mxu0  ;;  %1352 = vmatprep.subr.bf16.mxu1 %v1351_v44 }
  0xf4   :  { %v248_v46 = vpop.f32.mrb[15].mxu0  ;;  %1354 = vmatpush3.bf16.msra.mxu1 %v1351_v44 }
  0xf5   :  { %v1355_v47 = vpack.c.bf16 %v1182_v45, %v248_v46 }
  0xf7   :  { %1356 = vmatprep.subr.bf16.mxu1 %v1355_v47 }
  0xf8   :  { %1358 = vmatpush3.bf16.msra.mxu1 %v1355_v47 }
  0xfb   :  { %1216 = vmatmul.mubr.f32.vlgmr.msra.gmra.mrb[0].mxu1 %v1567_v48 }
  0xfc   :  { %1218 = vmatprep.mubr.f32.mxu1 %v1572_v49 }
  0xff   :  { %1219 = vmatmul.mubr.f32.gmra.mrb[2].mxu1 %v1579_v50 }
 0x100   :  { %1221 = vmatprep.mubr.f32.mxu1 %v1584_v51 }
 0x103   :  { %1222 = vmatmul.mubr.f32.gmra.mrb[4].mxu1 %v1591_v52 }
 0x104   :  { %1224 = vmatprep.mubr.f32.mxu1 %v27_v53 }
 0x107   :  { %1225 = vmatmul.mubr.f32.gmra.mrb[6].mxu1 %v1600_v54 }
 0x108   :  { %1227 = vmatprep.mubr.f32.mxu1 %v1605_v55 }
 0x10b   :  { %1228 = vmatmul.mubr.f32.gmra.mrb[8].mxu1 %v1612_v56 }
 0x10c   :  { %1230 = vmatprep.mubr.f32.mxu1 %v1617_v57 }
 0x10f   :  { %1231 = vmatmul.mubr.f32.gmra.mrb[10].mxu1 %v1624_v58 }
 0x110   :  { %1233 = vmatprep.mubr.f32.mxu1 %v1629_v59 }
 0x113   :  { %1234 = vmatmul.mubr.f32.gmra.mrb[12].mxu1 %v1636_v60 }
 0x114   :  { %1236 = vmatprep.mubr.f32.mxu1 %v1641_v61 }
 0x117   :  { %1237 = vmatmul.mubr.f32.gmra.mrb[14].mxu1 %v1648_v62 }
 0x118   :  { %1312 = vmatprep.mubr.f32.mxu1 %v27_v53 }
 0x1ce   :  { %v1217_v4 = vpop.f32.mrb[0].mxu1 }
 0x1cf   :  { %v333_v5 = vadd.f32 %v1217_v4, %v260_v3  ;;  %v327_v6 = vpop.f32.mrb[1].mxu1 }
 0x1d0   :  { %v328_v7 = vadd.f32 %v327_v6, %v260_v3 }
 0x1d1   :  { %v407_v10 = vmax.f32 %v333_v5, 0.0 }
 0x1d2   :  { %v406_v8 = vmax.f32 %v328_v7, 0.0  ;;  %v1220_v9 = vpop.f32.mrb[2].mxu1 }
 0x1d3   :  { %v343_v11 = vadd.f32 %v1220_v9, %v260_v3  ;;  %v337_v12 = vpop.f32.mrb[3].mxu1 }
 0x1d4   :  { %v338_v13 = vadd.f32 %v337_v12, %v260_v3  ;;  %1247 = vmatprep.mubr.msk.f32.mxu0 %vm422_vm2, %v406_v8 }
 0x1d5   :  { %1248 = vmatmul.mubr.msk.f32.vlgmr.msra.gmra.mrb[16].mxu0 %vm422_vm2, %v407_v10  ;;  %v409_v16 = vmax.f32 %v343_v11, 0.0 }
 0x1d6   :  { %v408_v14 = vmax.f32 %v338_v13, 0.0  ;;  %v1223_v15 = vpop.f32.mrb[4].mxu1 }
 0x1d7   :  { %v353_v18 = vadd.f32 %v1223_v15, %v260_v3  ;;  %v347_v19 = vpop.f32.mrb[5].mxu1 }
 0x1d8   :  { %v348_v20 = vadd.f32 %v347_v19, %v260_v3  ;;  %1250 = vmatprep.mubr.msk.f32.mxu0 %vm422_vm2, %v408_v14 }
 0x1d9   :  { %1251 = vmatmul.mubr.msk.f32.gmra.mrb[18].mxu0 %vm422_vm2, %v409_v16  ;;  %v411_v23 = vmax.f32 %v353_v18, 0.0 }
 0x1da   :  { %v410_v21 = vmax.f32 %v348_v20, 0.0  ;;  %v1226_v22 = vpop.f32.mrb[6].mxu1 }
 0x1db   :  { %v363_v24 = vadd.f32 %v1226_v22, %v260_v3  ;;  %v357_v25 = vpop.f32.mrb[7].mxu1 }
 0x1dc   :  { %v358_v26 = vadd.f32 %v357_v25, %v260_v3  ;;  %1253 = vmatprep.mubr.msk.f32.mxu0 %vm422_vm2, %v410_v21 }
 0x1dd   :  { %1254 = vmatmul.mubr.msk.f32.gmra.mrb[20].mxu0 %vm422_vm2, %v411_v23  ;;  %v413_v29 = vmax.f32 %v363_v24, 0.0 }
 0x1de   :  { %v412_v27 = vmax.f32 %v358_v26, 0.0  ;;  %v1229_v28 = vpop.f32.mrb[8].mxu1 }
 0x1df   :  { %v373_v30 = vadd.f32 %v1229_v28, %v260_v3  ;;  %v367_v31 = vpop.f32.mrb[9].mxu1 }
 0x1e0   :  { %v368_v32 = vadd.f32 %v367_v31, %v260_v3  ;;  %1256 = vmatprep.mubr.msk.f32.mxu0 %vm422_vm2, %v412_v27 }
 0x1e1   :  { %1257 = vmatmul.mubr.msk.f32.gmra.mrb[22].mxu0 %vm422_vm2, %v413_v29  ;;  %v415_v35 = vmax.f32 %v373_v30, 0.0 }
 0x1e2   :  { %v414_v33 = vmax.f32 %v368_v32, 0.0  ;;  %v1232_v34 = vpop.f32.mrb[10].mxu1 }
 0x1e3   :  { %v383_v36 = vadd.f32 %v1232_v34, %v260_v3  ;;  %v377_v37 = vpop.f32.mrb[11].mxu1 }
 0x1e4   :  { %v378_v38 = vadd.f32 %v377_v37, %v260_v3  ;;  %1259 = vmatprep.mubr.msk.f32.mxu0 %vm422_vm2, %v414_v33 }
 0x1e5   :  { %1260 = vmatmul.mubr.msk.f32.gmra.mrb[24].mxu0 %vm422_vm2, %v415_v35  ;;  %v417_v41 = vmax.f32 %v383_v36, 0.0 }
 0x1e6   :  { %v416_v39 = vmax.f32 %v378_v38, 0.0  ;;  %v1235_v40 = vpop.f32.mrb[12].mxu1 }
 0x1e7   :  { %v393_v42 = vadd.f32 %v1235_v40, %v260_v3  ;;  %v387_v43 = vpop.f32.mrb[13].mxu1 }
 0x1e8   :  { %v388_v44 = vadd.f32 %v387_v43, %v260_v3  ;;  %1262 = vmatprep.mubr.msk.f32.mxu0 %vm422_vm2, %v416_v39 }
 0x1e9   :  { %1263 = vmatmul.mubr.msk.f32.gmra.mrb[26].mxu0 %vm422_vm2, %v417_v41  ;;  %v419_v47 = vmax.f32 %v393_v42, 0.0 }
 0x1ea   :  { %v418_v45 = vmax.f32 %v388_v44, 0.0  ;;  %v1238_v46 = vpop.f32.mrb[14].mxu1 }
 0x1eb   :  { %v403_v53 = vadd.f32 %v1238_v46, %v260_v3  ;;  %v397_v63 = vpop.f32.mrb[15].mxu1 }
 0x1ec   :  { %v398_v1 = vadd.f32 %v397_v63, %v260_v3  ;;  %1265 = vmatprep.mubr.msk.f32.mxu0 %vm422_vm2, %v418_v45 }
 0x1ed   :  { %1266 = vmatmul.mubr.msk.f32.gmra.mrb[28].mxu0 %vm422_vm2, %v419_v47  ;;  %v421_v5 = vmax.f32 %v403_v53, 0.0 }
 0x1ee   :  { %v420_v4 = vmax.f32 %v398_v1, 0.0 }
 0x1f0   :  { %1268 = vmatprep.mubr.msk.f32.mxu0 %vm422_vm2, %v420_v4 }
 0x1f1   :  { %1269 = vmatmul.mubr.msk.f32.gmra.mrb[30].mxu0 %vm422_vm2, %v421_v5 }
 0x1f2   :  { %1303 = vmatprep.mubr.f32.mxu0 %v1549_v17 }
 0x2a8   :  { %v1249_v6 = vpop.f32.mrb[16].mxu0 }
 0x2a9   :  { %v537_v7 = vpop.f32.mrb[17].mxu0 }
 0x2aa   :  { %v1367_v8 = vpack.c.bf16 %v1249_v6, %v537_v7 }
 0x2ac   :  { %v1252_v9 = vpop.f32.mrb[18].mxu0  ;;  %1368 = vmatprep.subr.bf16.mxu0 %v1367_v8  ;;  %1399 = vmatprep.subr.bf16.mxu1 %v1367_v8 }
 0x2ad   :  { %v547_v10 = vpop.f32.mrb[19].mxu0  ;;  %1370 = vmatpush3.bf16.msra.mxu0 %v1367_v8  ;;  %1407 = vmatpush3.bf16.msra.mxu1 %v1367_v8 }
 0x2ae   :  { %v1371_v3 = vpack.c.bf16 %v1252_v9, %v547_v10 }
 0x2b0   :  { %v1255_v11 = vpop.f32.mrb[20].mxu0  ;;  %1372 = vmatprep.subr.bf16.mxu0 %v1371_v3  ;;  %1400 = vmatprep.subr.bf16.mxu1 %v1371_v3 }
 0x2b1   :  { %v557_v12 = vpop.f32.mrb[21].mxu0  ;;  %1374 = vmatpush3.bf16.msra.mxu0 %v1371_v3  ;;  %1408 = vmatpush3.bf16.msra.mxu1 %v1371_v3 }
 0x2b2   :  { %v1375_v13 = vpack.c.bf16 %v1255_v11, %v557_v12 }
 0x2b4   :  { %v1258_v14 = vpop.f32.mrb[22].mxu0  ;;  %1376 = vmatprep.subr.bf16.mxu0 %v1375_v13  ;;  %1401 = vmatprep.subr.bf16.mxu1 %v1375_v13 }
 0x2b5   :  { %v567_v17 = vpop.f32.mrb[23].mxu0  ;;  %1378 = vmatpush3.bf16.msra.mxu0 %v1375_v13  ;;  %1409 = vmatpush3.bf16.msra.mxu1 %v1375_v13 }
 0x2b6   :  { %v1379_v15 = vpack.c.bf16 %v1258_v14, %v567_v17 }
 0x2b8   :  { %v1261_v16 = vpop.f32.mrb[24].mxu0  ;;  %1380 = vmatprep.subr.bf16.mxu0 %v1379_v15  ;;  %1402 = vmatprep.subr.bf16.mxu1 %v1379_v15 }
 0x2b9   :  { %v577_v18 = vpop.f32.mrb[25].mxu0  ;;  %1382 = vmatpush3.bf16.msra.mxu0 %v1379_v15  ;;  %1410 = vmatpush3.bf16.msra.mxu1 %v1379_v15 }
 0x2ba   :  { %v1383_v19 = vpack.c.bf16 %v1261_v16, %v577_v18 }
 0x2bc   :  { %v1264_v20 = vpop.f32.mrb[26].mxu0  ;;  %1384 = vmatprep.subr.bf16.mxu0 %v1383_v19  ;;  %1403 = vmatprep.subr.bf16.mxu1 %v1383_v19 }
 0x2bd   :  { %v587_v21 = vpop.f32.mrb[27].mxu0  ;;  %1386 = vmatpush3.bf16.msra.mxu0 %v1383_v19  ;;  %1411 = vmatpush3.bf16.msra.mxu1 %v1383_v19 }
 0x2be   :  { %v1387_v22 = vpack.c.bf16 %v1264_v20, %v587_v21 }
 0x2c0   :  { %v1267_v23 = vpop.f32.mrb[28].mxu0  ;;  %1388 = vmatprep.subr.bf16.mxu0 %v1387_v22  ;;  %1404 = vmatprep.subr.bf16.mxu1 %v1387_v22 }
 0x2c1   :  { %v597_v24 = vpop.f32.mrb[29].mxu0  ;;  %1390 = vmatpush3.bf16.msra.mxu0 %v1387_v22  ;;  %1412 = vmatpush3.bf16.msra.mxu1 %v1387_v22 }
 0x2c2   :  { %v1391_v25 = vpack.c.bf16 %v1267_v23, %v597_v24 }
 0x2c4   :  { %v1270_v26 = vpop.f32.mrb[30].mxu0  ;;  %1392 = vmatprep.subr.bf16.mxu0 %v1391_v25  ;;  %1405 = vmatprep.subr.bf16.mxu1 %v1391_v25 }
 0x2c5   :  { %v607_v27 = vpop.f32.mrb[31].mxu0  ;;  %1394 = vmatpush3.bf16.msra.mxu0 %v1391_v25  ;;  %1413 = vmatpush3.bf16.msra.mxu1 %v1391_v25 }
 0x2c6   :  { %v1395_v28 = vpack.c.bf16 %v1270_v26, %v607_v27 }
 0x2c8   :  { %1396 = vmatprep.subr.bf16.mxu0 %v1395_v28  ;;  %1406 = vmatprep.subr.bf16.mxu1 %v1395_v28 }
 0x2c9   :  { %1398 = vmatpush3.bf16.msra.mxu0 %v1395_v28  ;;  %1414 = vmatpush3.bf16.msra.mxu1 %v1395_v28 }
 0x2cc   :  { %1304 = vmatmul.mubr.f32.vlgmr.msra.gmra.mrb[32].mxu0 %v1567_v48  ;;  %1313 = vmatmul.mubr.f32.vlgmr.msra.gmra.mrb[16].mxu1 %v1600_v54  ;;  %v618_v48 = vsub.s32 1, %v1651_v0 }
 0x2cd   :  { %1306 = vmatprep.mubr.f32.mxu0 %v1572_v49  ;;  %1315 = vmatprep.mubr.f32.mxu1 %v1605_v55 }
 0x2ce   :  { %v1693_v49 = vrot.slane %v1657_v2, %v618_v48 }
 0x2d0   :  { %1307 = vmatmul.mubr.f32.gmra.mrb[34].mxu0 %v1579_v50  ;;  %1316 = vmatmul.mubr.f32.gmra.mrb[18].mxu1 %v1612_v56  ;;  %v912_v50 = vsub.s32 2, %v1651_v0 }
 0x2d1   :  { %1309 = vmatprep.mubr.f32.mxu0 %v1584_v51  ;;  %1318 = vmatprep.mubr.f32.mxu1 %v1617_v57 }
 0x2d4   :  { %1310 = vmatmul.mubr.f32.gmra.mrb[36].mxu0 %v1591_v52  ;;  %1319 = vmatmul.mubr.f32.gmra.mrb[20].mxu1 %v1624_v58 }
 0x2d5   :  { %1321 = vmatprep.mubr.f32.mxu1 %v1629_v59 }
 0x2d8   :  { %1322 = vmatmul.mubr.f32.gmra.mrb[22].mxu1 %v1636_v60 }
 0x2d9   :  { %1324 = vmatprep.mubr.f32.mxu1 %v1641_v61 }
 0x2dc   :  { %1325 = vmatmul.mubr.f32.gmra.mrb[24].mxu1 %v1648_v62  ;;  %v1701_v62 = vrot.slane %v1657_v2, %v912_v50 }
 0x39f   :  { %v1305_v51 = vpop.f32.mrb[32].mxu0  ;;  %v1314_v54 = vpop.f32.mrb[16].mxu1 }
 0x3a0   :  { %v692_v52 = vadd.f32 %v1305_v51, %v1693_v49  ;;  %v722_v55 = vadd.f32 %v1314_v54, %v1693_v49  ;;  %v686_v56 = vpop.f32.mrb[33].mxu0  ;;  %v716_v57 = vpop.f32.mrb[17].mxu1 }
 0x3a1   :  { %v687_v58 = vadd.f32 %v686_v56, %v1693_v49  ;;  %v717_v59 = vadd.f32 %v716_v57, %v1693_v49 }
 0x3a2   :  { %v766_v60 = vmax.f32 %v692_v52, 0.0  ;;  %v772_v61 = vmax.f32 %v722_v55, 0.0 }
 0x3a3   :  { %v765_v29 = vmax.f32 %v687_v58, 0.0  ;;  %v771_v30 = vmax.f32 %v717_v59, 0.0  ;;  %v1308_v31 = vpop.f32.mrb[34].mxu0  ;;  %v1317_v32 = vpop.f32.mrb[18].mxu1 }
 0x3a4   :  { %v789_v33 = vsel %vm781_vm3, %v766_v60, 0.0  ;;  %v831_v34 = vsel %vm781_vm3, %v772_v61, 0.0  ;;  %v702_v35 = vadd.f32 %v1308_v31, %v1693_v49  ;;  %v732_v36 = vadd.f32 %v1317_v32, %v1693_v49  ;;  %v696_v37 = vpop.f32.mrb[35].mxu0  ;;  %v726_v38 = vpop.f32.mrb[19].mxu1 }
 0x3a5   :  { %v790_v39 = vrot.slane %v789_v33, 4  ;;  %v832_v40 = vrot.slane %v831_v34, 4  ;;  %v782_v41 = vsel %vm781_vm3, %v765_v29, 0.0  ;;  %v824_v42 = vsel %vm781_vm3, %v771_v30, 0.0 }
 0x3a6   :  { %v783_v43 = vrot.slane %v782_v41, 4  ;;  %v825_v44 = vrot.slane %v824_v42, 4  ;;  %v768_v45 = vmax.f32 %v702_v35, 0.0  ;;  %v774_v46 = vmax.f32 %v732_v36, 0.0 }
 0x3a7   :  { %v791_v47 = vadd.f32 %v790_v39, %v789_v33  ;;  %v833_v53 = vadd.f32 %v832_v40, %v831_v34  ;;  %v697_v63 = vadd.f32 %v696_v37, %v1693_v49  ;;  %v727_v1 = vadd.f32 %v726_v38, %v1693_v49  ;;  %v1311_v4 = vpop.f32.mrb[36].mxu0  ;;  %v1320_v5 = vpop.f32.mrb[20].mxu1 }
 0x3a8   :  { %v784_v6 = vadd.f32 %v783_v43, %v782_v41  ;;  %v826_v7 = vadd.f32 %v825_v44, %v824_v42  ;;  %v803_v8 = vsel %vm781_vm3, %v768_v45, 0.0  ;;  %v845_v9 = vsel %vm781_vm3, %v774_v46, 0.0  ;;  %v1713_v10 = vpop.f32.mrb[37].mxu0  ;;  %v1715_v3 = vpop.f32.mrb[21].mxu1 }
 0x3a9   :  { %v792_v11 = vrot.slane %v791_v47, 2  ;;  %v834_v12 = vrot.slane %v833_v53, 2  ;;  %v804_v13 = vrot.slane %v803_v8, 4  ;;  %v846_v14 = vrot.slane %v845_v9, 4 }
 0x3aa   :  { %v785_v17 = vrot.slane %v784_v6, 2  ;;  %v827_v15 = vrot.slane %v826_v7, 2  ;;  %v767_v16 = vmax.f32 %v697_v63, 0.0  ;;  %v773_v18 = vmax.f32 %v727_v1, 0.0 }
 0x3ab   :  { %v793_v19 = vadd.f32 %v792_v11, %v791_v47  ;;  %v835_v20 = vadd.f32 %v834_v12, %v833_v53  ;;  %v805_v21 = vadd.f32 %v804_v13, %v803_v8  ;;  %v847_v22 = vadd.f32 %v846_v14, %v845_v9  ;;  %v1717_v23 = vpop.f32.mrb[22].mxu1 }
 0x3ac   :  { %v786_v24 = vadd.f32 %v785_v17, %v784_v6  ;;  %v828_v25 = vadd.f32 %v827_v15, %v826_v7  ;;  %v796_v26 = vsel %vm781_vm3, %v767_v16, 0.0  ;;  %v838_v27 = vsel %vm781_vm3, %v773_v18, 0.0  ;;  %v746_v28 = vpop.f32.mrb[23].mxu1 }
 0x3ad   :  { %v794_v48 = vrot.slane %v793_v19, 1  ;;  %v836_v50 = vrot.slane %v835_v20, 1  ;;  %v806_v51 = vrot.slane %v805_v21, 2  ;;  %v848_v54 = vrot.slane %v847_v22, 2 }
 0x3ae   :  { %v787_v52 = vrot.slane %v786_v24, 1  ;;  %v829_v55 = vrot.slane %v828_v25, 1  ;;  %v797_v56 = vrot.slane %v796_v26, 4  ;;  %v839_v57 = vrot.slane %v838_v27, 4 }
 0x3af   :  { %v795_v58 = vadd.f32 %v794_v48, %v793_v19  ;;  %v1721_v59 = vadd.f32 %v836_v50, %v835_v20  ;;  %v807_v60 = vadd.f32 %v806_v51, %v805_v21  ;;  %v849_v61 = vadd.f32 %v848_v54, %v847_v22  ;;  %v1723_v29 = vpop.f32.mrb[24].mxu1 }
 0x3b0   :  { %v788_v30 = vadd.f32 %v787_v52, %v786_v24  ;;  %v830_v31 = vadd.f32 %v829_v55, %v828_v25  ;;  %v798_v32 = vadd.f32 %v797_v56, %v796_v26  ;;  %v840_v33 = vadd.f32 %v839_v57, %v838_v27  ;;  %v1725_v34 = vpop.f32.mrb[25].mxu1 }
 0x3b1   :  { %v895_v35 = vmul.f32 0.125, %v795_v58  ;;  %v808_v36 = vrot.slane %v807_v60, 1  ;;  %v850_v37 = vrot.slane %v849_v61, 1  ;;  %v712_v38 = vadd.f32 %v1311_v4, %v1693_v49 }
 0x3b2   :  { %v894_v39 = vmul.f32 0.125, %v788_v30  ;;  %v1728_v40 = vmul.f32 0.125, %v830_v31  ;;  %v799_v41 = vrot.slane %v798_v32, 2  ;;  %v841_v42 = vrot.slane %v840_v33, 2 }
 0x3b3   :  { %v1731_v43 = vmul.f32 %v1701_v62, %v895_v35  ;;  %v809_v44 = vadd.f32 %v808_v36, %v807_v60  ;;  %v851_v45 = vadd.f32 %v850_v37, %v849_v61  ;;  %v770_v46 = vmax.f32 %v712_v38, 0.0 }
 0x3b4   :  { %v1734_v47 = vmul.f32 %v1701_v62, %v894_v39  ;;  %v800_v53 = vadd.f32 %v799_v41, %v798_v32  ;;  %v842_v63 = vadd.f32 %v841_v42, %v840_v33  ;;  %v742_v1 = vadd.f32 %v1320_v5, %v1693_v49 }
 0x3b5   :  { %v946_v4 = vrot.slane %v1731_v43, 7  ;;  %v897_v6 = vmul.f32 0.125, %v809_v44  ;;  %v903_v7 = vmul.f32 0.125, %v851_v45  ;;  %v817_v8 = vsel %vm781_vm3, %v770_v46, 0.0 }
 0x3b6   :  { %v801_v9 = vrot.slane %v800_v53, 1  ;;  %v843_v11 = vrot.slane %v842_v63, 1  ;;  %v818_v12 = vrot.slane %v817_v8, 4  ;;  %v776_v13 = vmax.f32 %v742_v1, 0.0 }
 0x3b7   :  { %v1740_v14 = vmul.f32 %v1701_v62, %v897_v6  ;;  %v1743_v17 = vmul.f32 %v1701_v62, %v903_v7  ;;  %v707_v15 = vadd.f32 %v1713_v10, %v1693_v49  ;;  %v737_v5 = vadd.f32 %v1715_v3, %v1693_v49 }
 0x3b8   :  { %v802_v16 = vadd.f32 %v801_v9, %v800_v53  ;;  %v844_v18 = vadd.f32 %v843_v11, %v842_v63  ;;  %v819_v19 = vadd.f32 %v818_v12, %v817_v8  ;;  %v859_v20 = vsel %vm781_vm3, %v776_v13, 0.0 }
 0x3b9   :  { %v952_v21 = vrot.slane %v1740_v14, 5  ;;  %v967_v22 = vrot.slane %v1743_v17, 7  ;;  %v860_v24 = vrot.slane %v859_v20, 4  ;;  %v769_v25 = vmax.f32 %v707_v15, 0.0 }
 0x3ba   :  { %v896_v26 = vmul.f32 0.125, %v802_v16  ;;  %v902_v27 = vmul.f32 0.125, %v844_v18  ;;  %v820_v48 = vrot.slane %v819_v19, 2  ;;  %v775_v50 = vmax.f32 %v737_v5, 0.0 }
 0x3bb   :  { %v861_v51 = vadd.f32 %v860_v24, %v859_v20  ;;  %v810_v10 = vsel %vm781_vm3, %v769_v25, 0.0  ;;  %v752_v3 = vadd.f32 %v1717_v23, %v1693_v49  ;;  %v747_v54 = vadd.f32 %v746_v28, %v1693_v49 }
 0x3bc   :  { %v1757_v52 = vmul.f32 %v1701_v62, %v896_v26  ;;  %v1760_v55 = vmul.f32 %v1701_v62, %v902_v27  ;;  %v821_v56 = vadd.f32 %v820_v48, %v819_v19  ;;  %v811_v57 = vrot.slane %v810_v10, 4 }
 0x3bd   :  { %v862_v58 = vrot.slane %v861_v51, 2  ;;  %v852_v60 = vsel %vm781_vm3, %v775_v50, 0.0  ;;  %v778_v61 = vmax.f32 %v752_v3, 0.0  ;;  %v777_v30 = vmax.f32 %v747_v54, 0.0 }
 0x3be   :  { %v949_v31 = vrot.slane %v1757_v52, 6  ;;  %v822_v32 = vrot.slane %v821_v56, 1  ;;  %v812_v33 = vadd.f32 %v811_v57, %v810_v10  ;;  %v853_v23 = vrot.slane %v852_v60, 4 }
 0x3bf   :  { %v863_v35 = vadd.f32 %v862_v58, %v861_v51  ;;  %v873_v28 = vsel %vm781_vm3, %v778_v61, 0.0  ;;  %v866_v36 = vsel %vm781_vm3, %v777_v30, 0.0  ;;  %v762_v37 = vadd.f32 %v1723_v29, %v1693_v49 }
 0x3c0   :  { %v823_v38 = vadd.f32 %v822_v32, %v821_v56  ;;  %v813_v39 = vrot.slane %v812_v33, 2  ;;  %v854_v41 = vadd.f32 %v853_v23, %v852_v60  ;;  %v874_v42 = vrot.slane %v873_v28, 4 }
 0x3c1   :  { %v864_v44 = vrot.slane %v863_v35, 1  ;;  %v867_v45 = vrot.slane %v866_v36, 4  ;;  %v780_v46 = vmax.f32 %v762_v37, 0.0  ;;  %v757_v53 = vadd.f32 %v1725_v34, %v1693_v49 }
 0x3c2   :  { %v899_v63 = vmul.f32 0.125, %v823_v38  ;;  %v814_v1 = vadd.f32 %v813_v39, %v812_v33  ;;  %v855_v6 = vrot.slane %v854_v41, 2  ;;  %v875_v7 = vadd.f32 %v874_v42, %v873_v28 }
 0x3c3   :  { %v865_v8 = vadd.f32 %v864_v44, %v863_v35  ;;  %v868_v9 = vadd.f32 %v867_v45, %v866_v36  ;;  %v887_v29 = vsel %vm781_vm3, %v780_v46, 0.0  ;;  %v779_v11 = vmax.f32 %v757_v53, 0.0 }
 0x3c4   :  { %v815_v12 = vrot.slane %v814_v1, 1  ;;  %v856_v13 = vadd.f32 %v855_v6, %v854_v41  ;;  %v876_v15 = vrot.slane %v875_v7, 2  ;;  %v888_v5 = vrot.slane %v887_v29, 4 }
 0x3c5   :  { %v905_v16 = vmul.f32 0.125, %v865_v8  ;;  %v869_v18 = vrot.slane %v868_v9, 2  ;;  %v880_v49 = vsel %vm781_vm3, %v779_v11, 0.0  ;;  %v901_v34 = vmul.f32 0.125, %v1721_v59 }
 0x3c6   :  { %v816_v19 = vadd.f32 %v815_v12, %v814_v1  ;;  %v857_v20 = vrot.slane %v856_v13, 1  ;;  %v877_v24 = vadd.f32 %v876_v15, %v875_v7  ;;  %v889_v25 = vadd.f32 %v888_v5, %v887_v29 }
 0x3c7   :  { %v925_v26 = vmul.f32 %v1701_v62, %v905_v16  ;;  %v870_v27 = vadd.f32 %v869_v18, %v868_v9  ;;  %v881_v48 = vrot.slane %v880_v49, 4  ;;  %v919_v50 = vmul.f32 %v1701_v62, %v899_v63 }
 0x3c8   :  { %v898_v51 = vmul.f32 0.125, %v816_v19  ;;  %v858_v10 = vadd.f32 %v857_v20, %v856_v13  ;;  %v878_v3 = vrot.slane %v877_v24, 1  ;;  %v890_v54 = vrot.slane %v889_v25, 2 }
 0x3c9   :  { %v971_v56 = vrot.slane %v925_v26, 5  ;;  %v871_v57 = vrot.slane %v870_v27, 1  ;;  %v882_v59 = vadd.f32 %v881_v48, %v880_v49  ;;  %v920_v58 = vmul.f32 %v1701_v62, %v1728_v40 }
 0x3ca   :  { %v918_v60 = vmul.f32 %v1701_v62, %v898_v51  ;;  %v904_v61 = vmul.f32 0.125, %v858_v10  ;;  %v879_v30 = vadd.f32 %v878_v3, %v877_v24  ;;  %v891_v32 = vadd.f32 %v890_v54, %v889_v25 }
 0x3cb   :  { %v872_v33 = vadd.f32 %v871_v57, %v870_v27  ;;  %v883_v23 = vrot.slane %v882_v59, 2  ;;  %v921_v35 = vmul.f32 %v1701_v62, %v901_v34  ;;  %v948_v28 = vsel %vm947_vm4, %v946_v4, %v1734_v47 }
 0x3cc   :  { %v955_v36 = vrot.slane %v918_v60, 4  ;;  %v924_v37 = vmul.f32 %v1701_v62, %v904_v61  ;;  %v907_v38 = vmul.f32 0.125, %v879_v30  ;;  %v892_v39 = vrot.slane %v891_v32, 1 }
 0x3cd   :  { %v906_v40 = vmul.f32 0.125, %v872_v33  ;;  %v884_v41 = vadd.f32 %v883_v23, %v882_v59  ;;  %v951_v42 = vsel %vm950_vm5, %v949_v31, %v948_v28  ;;  %v958_v44 = vrot.slane %v919_v50, 3 }
 0x3ce   :  { %v969_v45 = vrot.slane %v924_v37, 6  ;;  %v927_v46 = vmul.f32 %v1701_v62, %v907_v38  ;;  %v893_v53 = vadd.f32 %v892_v39, %v891_v32  ;;  %v954_v43 = vsel %vm953_vm6, %v952_v21, %v951_v42 }
 0x3cf   :  { %v926_v47 = vmul.f32 %v1701_v62, %v906_v40  ;;  %v885_v4 = vrot.slane %v884_v41, 1  ;;  %v957_v63 = vsel %vm956_vm7, %v955_v36, %v954_v43  ;;  %v961_v1 = vrot.slane %v920_v58, 2 }
 0x3d0   :  { %v960_v6 = vsel %vm959_vm8, %v958_v44, %v957_v63  ;;  %v964_v52 = vrot.slane %v921_v35, 1  ;;  %v909_v7 = vmul.f32 0.125, %v893_v53  ;;  %v968_v31 = vsel %vm947_vm4, %v967_v22, %v1760_v55 }
 0x3d1   :  { %v973_v8 = vrot.slane %v926_v47, 4  ;;  %v886_v9 = vadd.f32 %v885_v4, %v884_v41  ;;  %v963_v14 = vsel %vm962_vm9, %v961_v1, %v960_v6  ;;  %v970_v21 = vsel %vm950_vm5, %v969_v45, %v968_v31 }
 0x3d2   :  { %v966_v29 = vsel %vm965_vm10, %v964_v52, %v963_v14  ;;  %v972_v11 = vsel %vm953_vm6, %v971_v56, %v970_v21  ;;  %v975_v12 = vrot.slane %v927_v46, 3  ;;  %v929_v17 = vmul.f32 %v1701_v62, %v909_v7 }
 0x3d3   :  { %v908_v13 = vmul.f32 0.125, %v886_v9  ;;  %v983_v15 = vsel %vm781_vm3, %v966_v29, 0.0  ;;  %v974_v5 = vsel %vm956_vm7, %v973_v8, %v972_v11  ;;  %v1445_v20 = vmov 0  }
 0x3d4   :  { %984 = vadd.xlane.f32.xlu0 %v983_v15  ;;  %v976_v22 = vsel %vm959_vm8, %v975_v12, %v974_v5  ;;  %v979_v18 = vrot.slane %v929_v17, 1  ;;  %1419 = vset.pattern.permute.xlu1 %v1445_v20  ;;  %v991_v24 = vsub.s32 3, %v1651_v0 }
 0x3d5   :  { %v928_v55 = vmul.f32 %v1701_v62, %v908_v13  ;;  %1420 = vset.pattern.permute.xlu0 %v1445_v20 }
 0x3d6   :  { %v992_v25 = vrot.slane %v1657_v2, %v991_v24 }
 0x3d7   :  { %v977_v16 = vrot.slane %v928_v55, 2 }
 0x3d9   :  { %v978_v49 = vsel %vm962_vm9, %v977_v16, %v976_v22 }
 0x3da   :  { %v980_v34 = vsel %vm965_vm10, %v979_v18, %v978_v49 }
 0x3db   :  { %v986_v19 = vsel %vm781_vm3, %v980_v34, 0.0 }
 0x3dc   :  { %987 = vadd.xlane.f32.xlu0 %v986_v19 }
 0x461   :  { %v985_v26 = vpop.xlane.xlu0 %984 }
 0x462   :  { %v993_v27 = vadd.f32 %v992_v25, %v985_v26 }
 0x464   :  { %997 = vperm.xlu1 %1419, %v993_v27  }
 0x469   :  { %v988_v62 = vpop.xlane.xlu0 %987 }
 0x46a   :  { %v994_v48 = vadd.f32 %v992_v25, %v988_v62 }
 0x46c   :  { %1002 = vperm.xlu1 %1419, %v994_v48  }
 0x4e3   :  { %v998_v50 = vpop.permute.xlu1 %997 }
 0x4e4   :  { %1005 = vst [vmem:[#allocation2] sm:$0xff] %v998_v50 }
 0x4eb   :  { %v1003_v51 = vpop.permute.xlu1 %1002 }
 0x4ec   :  { %1006 = vst [vmem:[#allocation2 + $0x8] sm:$0xff] %v1003_v51 }
 0x4ed   :  { %1432 = shalt.err (!%p1429_p4)
}
 0x4ee   :  { %s1433_s15 = scalar_lea.hbm %s1829_s5, 256 }
 0x4ef   :  { %p1434_p5 = scmp.ne.s32.totalorder %s1829_s5, %s1433_s15  ;;  %p1437_p6 = scmp.lt.u32.totalorder %s1433_s15, %s1829_s5 }
 0x4f1   :  { %p1439_p7 = pnand %p1437_p6, %p1434_p5 }
 0x4f3   :  { %1442 = shalt.err (!%p1439_p7)
}
 0x4f4   :  { %s1447_s20 = smov 128   ;;  %s1448_s21 = smov 8  }
 0x4f5   :  { %1018 = dma.vmem_to_hbm [thread:$0]  %s1013_s4, 256, %s1829_s5, [#allocation3], %s1447_s20, %s1447_s20, %s1448_s21  }
 0x4f6   :  { %1443 = dma.done.wait [#allocation3], 256  }
 0x4f7   :  { %1444 = vsyncadd [#allocation3], 4294967040 }
 0x4f8   :  { %1022 = vsyncpa [#allocation3], 1 }

</bundles_post_ra>
